<compile_context>
chip_gen: v5e
topology: v5e:2x2
jax: 0.10.0
libtpu: 0.0.40
codegen_flags: <defaults>
</compile_context>

<pallas_src>
import functools

import jax
import jax.numpy as jnp
import numpy as np
from jax.experimental import pallas as pl
from jax.experimental.pallas import tpu as pltpu

_SMALL_N = 1024


def _encoder_kernel(x_ref, cb_ref, o_ref, *, grid_size):
    # x_ref:  (2, Nt)   f32 -- row 0 = px (first spatial axis), row 1 = py
    # cb_ref: (C, G*G)  f32 -- codebook flattened, column k = i*G + j
    # o_ref:  (Nt, C)   f32
    g = grid_size
    nt = x_ref.shape[1]
    px = x_ref[0:1, :]                                            # (1, Nt)
    py = x_ref[1:2, :]                                            # (1, Nt)
    # Grid index values 0..G-1 along sublanes, generated in-kernel.
    idx = jax.lax.broadcasted_iota(jnp.int32, (g, nt), 0).astype(jnp.float32)
    # Closed-form bilinear "tent" factors at (G, Nt); OOB neighbours -> 0.
    wi = jnp.maximum(0.0, 1.0 - jnp.abs(idx - px))                # (G, Nt)
    wj = jnp.maximum(0.0, 1.0 - jnp.abs(idx - py))                # (G, Nt)
    # Rank-1 expansion W[i*G+j, n] = wi[i, n] * wj[j, n]; only this multiply
    # runs at the full (G*G, Nt) size (broadcast/reshape are layout work).
    w = (wi[:, None, :] * wj[None, :, :]).reshape(g * g, nt)      # (GG, Nt)
    out_cn = jnp.dot(cb_ref[...], w,
                     preferred_element_type=jnp.float32)          # (C, Nt)
    # Small (C, Nt) -> (Nt, C) transpose (XLU) so output lands in the module's
    # (N, C) layout with no post-kernel XLA transpose.
    o_ref[...] = out_cn.T.astype(o_ref.dtype)


def _round_up(a, b):
    return (a + b - 1) // b * b


def encoder_forward(v, x, *, tile_n=4096):
    """Pallas equivalent of Encoder.forward.

    v: (num_neurons, num_grid, num_grid) float32 codebook
    x: (N, 2) float32 coordinates in grid units (may be out of bounds)
    returns: (N, num_neurons) float32
    """
    C, G, G2 = v.shape
    assert G == G2
    GG = G * G
    N = x.shape[0]

    cb = v.reshape(C, GG).astype(jnp.float32)                     # (C, GG)
    x_t = x.astype(jnp.float32).T                                 # (2, N), lane-dense

    kernel = functools.partial(_encoder_kernel, grid_size=G)
    vmem = pltpu.MemorySpace.VMEM

    if N <= _SMALL_N:
        # Small-N fast path: one resident block, no grid / pipelining overhead.
        return pl.pallas_call(
            kernel,
            out_shape=jax.ShapeDtypeStruct((N, C), jnp.float32),
            in_specs=[pl.BlockSpec(memory_space=vmem)] * 2,
            out_specs=pl.BlockSpec(memory_space=vmem),
        )(x_t, cb)

    # Large-N path: tile over N.  Cap the tile so there are >= 4 grid steps
    # (feeds both v7x TensorCores); keep it a multiple of 128 lanes.
    tn = min(_round_up(max(tile_n, 128), 128),
             _round_up(pl.cdiv(N, 4), 128))
    num_tiles = pl.cdiv(N, tn)

    return pl.pallas_call(
        kernel,
        out_shape=jax.ShapeDtypeStruct((N, C), jnp.float32),
        grid_spec=pltpu.PrefetchScalarGridSpec(
            num_scalar_prefetch=0,
            grid=(num_tiles,),
            in_specs=[
                pl.BlockSpec((2, tn), lambda i: (0, i)),          # coords tile
                pl.BlockSpec((C, GG), lambda i: (0, 0)),          # codebook (resident)
            ],
            out_specs=pl.BlockSpec((tn, C), lambda i: (i, 0)),    # row tiles of (N, C)
        ),
        compiler_params=pltpu.CompilerParams(
            dimension_semantics=("parallel",),                    # shard N-tiles on v7x
            vmem_limit_bytes=40 * 1024 * 1024),                   # v5e default 16 MiB is tight
    )(x_t, cb)


def _reference_forward(v, x):
    """Pure-JAX reference of torch grid_sample bilinear / zeros / align_corners=False."""
    C, G, _ = v.shape
    px, py = x[:, 0], x[:, 1]
    ix0 = jnp.floor(px).astype(jnp.int32)
    iy0 = jnp.floor(py).astype(jnp.int32)
    fx = px - jnp.floor(px)
    fy = py - jnp.floor(py)

    def sample(ii, jj):
        valid = (ii >= 0) & (ii < G) & (jj >= 0) & (jj < G)
        vals = v[:, jnp.clip(ii, 0, G - 1), jnp.clip(jj, 0, G - 1)]  # (C, N)
        return jnp.where(valid[None, :], vals, 0.0)

    out = (sample(ix0, iy0) * ((1 - fx) * (1 - fy))[None]
           + sample(ix0 + 1, iy0) * (fx * (1 - fy))[None]
           + sample(ix0, iy0 + 1) * ((1 - fx) * fy)[None]
           + sample(ix0 + 1, iy0 + 1) * (fx * fy)[None])
    return out.T  # (N, C)


if __name__ == "__main__":
    # Shapes consistent with the module: num_neurons=32, num_grid=16.
    num_neurons = 32
    num_grid = 16

    key = jax.random.PRNGKey(0)
    k_v, k_x1, k_x2 = jax.random.split(key, 3)

    # Deterministic parameter init: v ~ Normal(0, 0.001), shape (C, G, G).
    v = 0.001 * jax.random.normal(
        k_v, (num_neurons, num_grid, num_grid), dtype=jnp.float32)

    # Path 1: tiny N -> no-grid fast path (also exercises ragged shapes).
    x_small = jax.random.uniform(k_x1, (8, 2), dtype=jnp.float32) * num_grid
    out_small = jax.block_until_ready(encoder_forward(v, x_small))
    np.testing.assert_allclose(
        np.asarray(out_small), np.asarray(_reference_forward(v, x_small)),
        rtol=1e-5, atol=1e-6)

    # Path 2: larger N with out-of-bounds coords -> tiled grid path with a
    # resident codebook block and a partial (clipped) last tile.
    x_big = (jax.random.uniform(k_x2, (2600, 2), dtype=jnp.float32)
             * (num_grid + 2.0) - 1.0)
    out_big = jax.block_until_ready(encoder_forward(v, x_big, tile_n=512))
    np.testing.assert_allclose(
        np.asarray(out_big), np.asarray(_reference_forward(v, x_big)),
        rtol=1e-5, atol=1e-6)

    print("KERNEL_OK")
</pallas_src>

<mosaic_0001>
module attributes {stable_mosaic.version = 11 : i64} {
  func.func @_encoder_kernel(%arg0: memref<2x8xf32, #tpu.memory_space<vmem>>, %arg1: memref<32x256xf32, #tpu.memory_space<vmem>>, %arg2: memref<8x32xf32, #tpu.memory_space<vmem>>) attributes {dimension_semantics = [], scalar_prefetch = 0 : i64, scratch_operands = 0 : i64, tpu.core_type = #tpu.core_type<tc>} {
    %c0 = arith.constant 0 : index
    %c0_0 = arith.constant 0 : index
    %0 = vector.load %arg0[%c0, %c0_0] : memref<2x8xf32, #tpu.memory_space<vmem>>, vector<1x8xf32>
    %c1 = arith.constant 1 : index
    %c0_1 = arith.constant 0 : index
    %1 = vector.load %arg0[%c1, %c0_1] : memref<2x8xf32, #tpu.memory_space<vmem>>, vector<1x8xf32>
    %2 = tpu.iota {dimensions = array<i32: 0>} : vector<16x8xi32>
    %3 = arith.sitofp %2 : vector<16x8xi32> to vector<16x8xf32>
    %4 = vector.broadcast %0 : vector<1x8xf32> to vector<16x8xf32>
    %5 = arith.subf %3, %4 : vector<16x8xf32>
    %6 = math.absf %5 : vector<16x8xf32>
    %cst = arith.constant 1.000000e+00 : f32
    %7 = vector.broadcast %cst : f32 to vector<16x8xf32>
    %8 = arith.subf %7, %6 : vector<16x8xf32>
    %cst_2 = arith.constant 0.000000e+00 : f32
    %9 = vector.broadcast %cst_2 : f32 to vector<16x8xf32>
    %10 = arith.maximumf %9, %8 : vector<16x8xf32>
    %11 = vector.broadcast %1 : vector<1x8xf32> to vector<16x8xf32>
    %12 = arith.subf %3, %11 : vector<16x8xf32>
    %13 = math.absf %12 : vector<16x8xf32>
    %cst_3 = arith.constant 1.000000e+00 : f32
    %14 = vector.broadcast %cst_3 : f32 to vector<16x8xf32>
    %15 = arith.subf %14, %13 : vector<16x8xf32>
    %cst_4 = arith.constant 0.000000e+00 : f32
    %16 = vector.broadcast %cst_4 : f32 to vector<16x8xf32>
    %17 = arith.maximumf %16, %15 : vector<16x8xf32>
    %18 = vector.shape_cast %10 : vector<16x8xf32> to vector<16x1x8xf32>
    %19 = vector.shape_cast %17 : vector<16x8xf32> to vector<1x16x8xf32>
    %20 = vector.broadcast %18 : vector<16x1x8xf32> to vector<16x16x8xf32>
    %21 = vector.broadcast %19 : vector<1x16x8xf32> to vector<16x16x8xf32>
    %22 = arith.mulf %20, %21 : vector<16x16x8xf32>
    %23 = vector.shape_cast %22 : vector<16x16x8xf32> to vector<256x8xf32>
    %c0_5 = arith.constant 0 : index
    %c0_6 = arith.constant 0 : index
    %24 = vector.load %arg1[%c0_5, %c0_6] : memref<32x256xf32, #tpu.memory_space<vmem>>, vector<32x256xf32>
    %cst_7 = arith.constant dense<0.000000e+00> : vector<32x8xf32>
    %25 = tpu.matmul %24, %23, %cst_7 {dimension_numbers = #tpu.dot_dimension_numbers<[1], [0], [0], [1], [0, 0, 1, 1], [], []>} : vector<32x256xf32>, vector<256x8xf32>, vector<32x8xf32> -> vector<32x8xf32>
    %26 = tpu.transpose %25, [1, 0] : vector<32x8xf32> -> vector<8x32xf32>
    %c0_8 = arith.constant 0 : index
    %c0_9 = arith.constant 0 : index
    %27 = vector.load %arg2[%c0_8, %c0_9] : memref<8x32xf32, #tpu.memory_space<vmem>>, vector<8x32xf32>
    tpu.vector_store %arg2[%c0_8, %c0_9], %26 {strides = array<i32>} : memref<8x32xf32, #tpu.memory_space<vmem>>, vector<8x32xf32>,
    return
  }
}

</mosaic_0001>

<bundles_post_ra>
// kernel: tpu_custom_call.1
= control target key start
LH: loop header
LB: loop body
LE: loop exit
PB: predicated region body
PF: predicated region fallthrough
CT: control target
= control target key end

     0   :  { %7 = vsyncpa [#allocation3], 0  ;;  %s468_s0 = inlined_call_operand.hbm [shape: f32[2,8], index: 0, kind: input, shape index: {}]   ;;  %s469_s1 = inlined_call_operand.hbm [shape: f32[32,256], index: 1, kind: input, shape index: {}]   ;;  %s470_s2 = inlined_call_operand.hbm [shape: f32[8,32], index: 2, kind: output, shape index: {}]  }
   0x1   :  { %8 = vsyncpa [#allocation6], 0 }
   0x2   :  { %9 = vsyncpa [#allocation4], 0  ;;  %s15_s11 = sshll.u32 %s468_s0, 4  ;;  %s383_s12 = smov [#allocation2]   ;;  %s16_s11 = int_to_ptr.hbm [resolvable:$true] %s15_s11 }
   0x3   :  { %s17_s13 = sshll.u32 %s383_s12, 4  ;;  %s25_s16 = sshll.u32 %s469_s1, 4  ;;  %s18_s13 = int_to_ptr.vmem [resolvable:$true] %s17_s13  ;;  %s26_s16 = int_to_ptr.hbm [resolvable:$true] %s25_s16 }
   0x4   :  { %20 = dma.hbm_to_vmem [thread:$0]  %s16_s11, 32, %s18_s13, [#allocation3]  }
   0x5   :  { %s384_s17 = smov [#allocation5]   ;;  %s385_s19 = smov 256  }
   0x6   :  { %s27_s18 = sshll.u32 %s384_s17, 4  ;;  %s386_s20 = smov 16   ;;  %s28_s18 = int_to_ptr.vmem [resolvable:$true] %s27_s18 }
   0x7   :  { %33 = dma.hbm_to_vmem [thread:$0]  %s26_s16, 1024, %s28_s18, [#allocation6], %s385_s19, %s385_s19, %s386_s20  }
   0x8   :  { %377 = dma.done.wait [#allocation3], 32  }
   0x9   :  { %378 = vsyncadd [#allocation3], 4294967264 }
   0xa   :  { %379 = dma.done.wait [#allocation6], 1024  }
   0xb   :  { %380 = vsyncadd [#allocation6], 4294966272  ;;  %v44_v0 = vlaneseq  ;;  %v303_v5 = vld [vmem:[#allocation2] ss:$0 sm:$0xff]  ;;  %v304_v6 = vld [vmem:[#allocation2 + $0x1] ss:$0 sm:$0xff] }
   0xc   :  { %s387_s0 = smov [#allocation7]   ;;  %s254_s23 = sshll.u32 %s470_s2, 4  ;;  %vm245_vm0 = vcmask 261120   ;;  %s255_s23 = int_to_ptr.hbm [resolvable:$true] %s254_s23 }
   0xd   :  { %v45_v1 = vshrl.u32 %v44_v0, 7  ;;  %s252_s1 = sshll.u32 %s387_s0, 4  ;;  %s253_s1 = int_to_ptr.vmem [resolvable:$true] %s252_s1 }
   0xf   :  { %v46_v2 = vadd.s32 8, %v45_v1  ;;  %v47_v3 = vcvt.s32.f32 %v45_v1 }
  0x11   :  { %v48_v4 = vcvt.s32.f32 %v46_v2  ;;  %v50_v7 = vsub.f32 %v47_v3, %v303_v5  ;;  %v59_v9 = vsub.f32 %v47_v3, %v304_v6 }
  0x13   :  { %v51_v8 = vsub.f32 %v48_v4, %v303_v5  ;;  %v60_v10 = vsub.f32 %v48_v4, %v304_v6  ;;  %v52_v11 = vand.u32 2147483647, %v50_v7  ;;  %v61_v13 = vand.u32 2147483647, %v59_v9 }
  0x15   :  { %v53_v12 = vand.u32 2147483647, %v51_v8  ;;  %v62_v14 = vand.u32 2147483647, %v60_v10  ;;  %v54_v15 = vsub.f32 1.0, %v52_v11  ;;  %v63_v17 = vsub.f32 1.0, %v61_v13 }
  0x17   :  { %v55_v16 = vsub.f32 1.0, %v53_v12  ;;  %v64_v18 = vsub.f32 1.0, %v62_v14  ;;  %v409_v19 = vmax.f32 %v54_v15, 0.0  ;;  %v413_v21 = vmax.f32 %v63_v17, 0.0 }
  0x19   :  { %v411_v20 = vmax.f32 %v55_v16, 0.0  ;;  %v415_v22 = vmax.f32 %v64_v18, 0.0  ;;  %v75_v23 = vrot.slane %v409_v19, 7  ;;  %v74_v25 = vrot.slane %v409_v19, 6 }
  0x1a   :  { %v73_v27 = vrot.slane %v409_v19, 5  ;;  %v72_v37 = vrot.slane %v409_v19, 4  ;;  %v71_v49 = vrot.slane %v409_v19, 3  ;;  %v70_v57 = vrot.slane %v409_v19, 2 }
  0x1b   :  { %v82_v24 = vrot.slane %v411_v20, 7  ;;  %v81_v26 = vrot.slane %v411_v20, 6  ;;  %v80_v28 = vrot.slane %v411_v20, 5  ;;  %v90_v29 = vperm.slane %v75_v23, 0  ;;  %v147_v23 = vld [vmem:[#allocation5] sm:$0xff] }
  0x1c   :  { %v89_v31 = vperm.slane %v74_v25, 0  ;;  %v79_v38 = vrot.slane %v411_v20, 4  ;;  %v88_v41 = vperm.slane %v73_v27, 0  ;;  %v87_v45 = vperm.slane %v72_v37, 0  ;;  %v151_v25 = vld [vmem:[#allocation5 + $0x20] sm:$0xff]  ;;  %v153_v27 = vld [vmem:[#allocation5 + $0x30] sm:$0xff] }
  0x1d   :  { %v98_v30 = vperm.slane %v82_v24, 0  ;;  %v97_v32 = vperm.slane %v81_v26, 0  ;;  %v130_v33 = vmul.f32 %v90_v29, %v415_v22  ;;  %v129_v35 = vmul.f32 %v90_v29, %v413_v21  ;;  %v148_v24 = vld [vmem:[#allocation5 + $0x8] sm:$0xff]  ;;  %v149_v26 = vld [vmem:[#allocation5 + $0x10] sm:$0xff] }
  0x1e   :  { %v128_v39 = vmul.f32 %v89_v31, %v415_v22  ;;  %v96_v42 = vperm.slane %v80_v28, 0  ;;  %v127_v43 = vmul.f32 %v89_v31, %v413_v21  ;;  %v95_v46 = vperm.slane %v79_v38, 0  ;;  %v154_v28 = vld [vmem:[#allocation5 + $0x38] sm:$0xff] }
  0x1f   :  { %v146_v34 = vmul.f32 %v98_v30, %v415_v22  ;;  %v145_v36 = vmul.f32 %v98_v30, %v413_v21  ;;  %155 = vmatpush.msra.mxu0 %v130_v33  ;;  %v144_v40 = vmul.f32 %v97_v32, %v415_v22  ;;  %265 = vmatpush.msra.mxu2 %v130_v33  ;;  %v78_v50 = vrot.slane %v411_v20, 3 }
  0x20   :  { %v143_v44 = vmul.f32 %v97_v32, %v413_v21  ;;  %v126_v47 = vmul.f32 %v88_v41, %v415_v22  ;;  %v142_v48 = vmul.f32 %v96_v42, %v415_v22  ;;  %v125_v51 = vmul.f32 %v88_v41, %v413_v21 }
  0x21   :  { %184 = vmatpush.msra.mxu1 %v146_v34  ;;  %281 = vmatpush.msra.mxu3 %v146_v34  ;;  %v141_v52 = vmul.f32 %v96_v42, %v413_v21  ;;  %v124_v53 = vmul.f32 %v87_v45, %v415_v22  ;;  %v140_v54 = vmul.f32 %v95_v46, %v415_v22  ;;  %v86_v55 = vperm.slane %v71_v49, 0 }
  0x22   :  { %156 = vmatpush.msra.mxu0 %v129_v35  ;;  %266 = vmatpush.msra.mxu2 %v129_v35  ;;  %v94_v56 = vperm.slane %v78_v50, 0  ;;  %v77_v58 = vrot.slane %v411_v20, 2  ;;  %v123_v59 = vmul.f32 %v87_v45, %v413_v21  ;;  %v139_v60 = vmul.f32 %v95_v46, %v413_v21 }
  0x23   :  { %185 = vmatpush.msra.mxu1 %v145_v36  ;;  %282 = vmatpush.msra.mxu3 %v145_v36  ;;  %v69_v61 = vrot.slane %v409_v19, 1  ;;  %v76_v62 = vrot.slane %v411_v20, 1  ;;  %v122_v63 = vmul.f32 %v86_v55, %v415_v22  ;;  %v85_v1 = vperm.slane %v70_v57, 0 }
  0x24   :  { %157 = vmatpush.msra.mxu0 %v128_v39  ;;  %267 = vmatpush.msra.mxu2 %v128_v39  ;;  %v138_v0 = vmul.f32 %v94_v56, %v415_v22  ;;  %v93_v2 = vperm.slane %v77_v58, 0  ;;  %v121_v3 = vmul.f32 %v86_v55, %v413_v21  ;;  %v137_v4 = vmul.f32 %v94_v56, %v413_v21 }
  0x25   :  { %186 = vmatpush.msra.mxu1 %v144_v40  ;;  %283 = vmatpush.msra.mxu3 %v144_v40  ;;  %v120_v5 = vmul.f32 %v85_v1, %v415_v22  ;;  %v84_v7 = vperm.slane %v69_v61, 0  ;;  %v92_v8 = vperm.slane %v76_v62, 0  ;;  %v119_v9 = vmul.f32 %v85_v1, %v413_v21 }
  0x26   :  { %158 = vmatpush.msra.mxu0 %v127_v43  ;;  %268 = vmatpush.msra.mxu2 %v127_v43  ;;  %v136_v6 = vmul.f32 %v93_v2, %v415_v22  ;;  %v135_v10 = vmul.f32 %v93_v2, %v413_v21  ;;  %v83_v13 = vperm.slane %v409_v19, 0  ;;  %v91_v14 = vperm.slane %v411_v20, 0 }
  0x27   :  { %187 = vmatpush.msra.mxu1 %v143_v44  ;;  %284 = vmatpush.msra.mxu3 %v143_v44  ;;  %v118_v11 = vmul.f32 %v84_v7, %v415_v22  ;;  %v134_v12 = vmul.f32 %v92_v8, %v415_v22  ;;  %v117_v15 = vmul.f32 %v84_v7, %v413_v21 }
  0x28   :  { %159 = vmatpush.msra.mxu0 %v126_v47  ;;  %269 = vmatpush.msra.mxu2 %v126_v47  ;;  %v133_v16 = vmul.f32 %v92_v8, %v413_v21  ;;  %v116_v17 = vmul.f32 %v83_v13, %v415_v22  ;;  %v132_v18 = vmul.f32 %v91_v14, %v415_v22  ;;  %v152_v22 = vld [vmem:[#allocation5 + $0x28] sm:$0xff] }
  0x29   :  { %188 = vmatpush.msra.mxu1 %v142_v48  ;;  %285 = vmatpush.msra.mxu3 %v142_v48  ;;  %v115_v19 = vmul.f32 %v83_v13, %v413_v21  ;;  %v131_v20 = vmul.f32 %v91_v14, %v413_v21  ;;  %v150_v21 = vld [vmem:[#allocation5 + $0x18] sm:$0xff] }
  0x2a   :  { %160 = vmatpush.msra.mxu0 %v125_v51  ;;  %270 = vmatpush.msra.mxu2 %v125_v51 }
  0x2b   :  { %189 = vmatpush.msra.mxu1 %v141_v52  ;;  %286 = vmatpush.msra.mxu3 %v141_v52 }
  0x2c   :  { %161 = vmatpush.msra.mxu0 %v124_v53  ;;  %271 = vmatpush.msra.mxu2 %v124_v53 }
  0x2d   :  { %190 = vmatpush.msra.mxu1 %v140_v54  ;;  %287 = vmatpush.msra.mxu3 %v140_v54 }
  0x2e   :  { %162 = vmatpush.msra.mxu0 %v123_v59  ;;  %272 = vmatpush.msra.mxu2 %v123_v59 }
  0x2f   :  { %191 = vmatpush.msra.mxu1 %v139_v60  ;;  %288 = vmatpush.msra.mxu3 %v139_v60 }
  0x30   :  { %163 = vmatpush.msra.mxu0 %v122_v63  ;;  %273 = vmatpush.msra.mxu2 %v122_v63 }
  0x31   :  { %192 = vmatpush.msra.mxu1 %v138_v0  ;;  %289 = vmatpush.msra.mxu3 %v138_v0 }
  0x32   :  { %164 = vmatpush.msra.mxu0 %v121_v3  ;;  %274 = vmatpush.msra.mxu2 %v121_v3 }
  0x33   :  { %193 = vmatpush.msra.mxu1 %v137_v4  ;;  %290 = vmatpush.msra.mxu3 %v137_v4 }
  0x34   :  { %165 = vmatpush.msra.mxu0 %v120_v5  ;;  %275 = vmatpush.msra.mxu2 %v120_v5 }
  0x35   :  { %194 = vmatpush.msra.mxu1 %v136_v6  ;;  %291 = vmatpush.msra.mxu3 %v136_v6 }
  0x36   :  { %166 = vmatpush.msra.mxu0 %v119_v9  ;;  %276 = vmatpush.msra.mxu2 %v119_v9 }
  0x37   :  { %195 = vmatpush.msra.mxu1 %v135_v10  ;;  %292 = vmatpush.msra.mxu3 %v135_v10 }
  0x38   :  { %167 = vmatpush.msra.mxu0 %v118_v11  ;;  %277 = vmatpush.msra.mxu2 %v118_v11 }
  0x39   :  { %196 = vmatpush.msra.mxu1 %v134_v12  ;;  %293 = vmatpush.msra.mxu3 %v134_v12 }
  0x3a   :  { %168 = vmatpush.msra.mxu0 %v117_v15  ;;  %278 = vmatpush.msra.mxu2 %v117_v15 }
  0x3b   :  { %197 = vmatpush.msra.mxu1 %v133_v16  ;;  %294 = vmatpush.msra.mxu3 %v133_v16 }
  0x3c   :  { %169 = vmatpush.msra.mxu0 %v116_v17  ;;  %279 = vmatpush.msra.mxu2 %v116_v17 }
  0x3d   :  { %198 = vmatpush.msra.mxu1 %v132_v18  ;;  %295 = vmatpush.msra.mxu3 %v132_v18 }
  0x3e   :  { %170 = vmatpush.msra.mxu0 %v115_v19  ;;  %280 = vmatpush.msra.mxu2 %v115_v19 }
  0x3f   :  { %199 = vmatpush.msra.mxu1 %v131_v20  ;;  %171 = vmatmul.f32.vlgmr.msra.gmra.mxu0 %v147_v23 }
  0x40   :  { %200 = vmatmul.f32.vlgmr.msra.gmra.mxu1 %v148_v24  ;;  %296 = vmatpush.msra.mxu3 %v131_v20 }
  0x41   :  { %177 = vmatmul.f32.vlgmr.msra.gmra.mxu2 %v151_v25  ;;  %206 = vmatmul.f32.vlgmr.msra.gmra.mxu3 %v152_v22 }
  0x47   :  { %174 = vmatmul.f32.gmra.mxu0 %v149_v26 }
  0x48   :  { %203 = vmatmul.f32.gmra.mxu1 %v150_v21 }
  0x49   :  { %180 = vmatmul.f32.gmra.mxu2 %v153_v27  ;;  %209 = vmatmul.f32.gmra.mxu3 %v154_v28 }
  0xbc   :  { %v172_v29 = vpop.f32.mrf.mxu0 }
  0xbd   :  { %v201_v30 = vpop.f32.mrf.mxu1 }
  0xbe   :  { %v202_v31 = vadd.f32 %v201_v30, %v172_v29 }
  0xc0   :  { %213 = vxpose.xlu0.b32.start [1/4] (short) (narrow) %v202_v31, 8 }
  0xc4   :  { %v175_v32 = vpop.f32.mrf.mxu0  ;;  %v178_v35 = vpop.f32.mrf.mxu2 }
  0xc5   :  { %v204_v33 = vpop.f32.mrf.mxu1  ;;  %v207_v36 = vpop.f32.mrf.mxu3 }
  0xc6   :  { %v205_v34 = vadd.f32 %v204_v33, %v175_v32  ;;  %v208_v37 = vadd.f32 %v207_v36, %v178_v35 }
  0xc8   :  { %214 = vxpose.xlu0.b32.cont [2/4] (short) (narrow) %v205_v34, 8 }
  0xcc   :  { %v181_v38 = vpop.f32.mrf.mxu2 }
  0xcd   :  { %v210_v39 = vpop.f32.mrf.mxu3 }
  0xce   :  { %v211_v40 = vadd.f32 %v210_v39, %v181_v38 }
  0xd0   :  { %215 = vxpose.xlu0.b32.cont [3/4] (short) (narrow) %v208_v37, 8 }
  0xd8   :  { %216 = vxpose.xlu0.b32.end [4/4] (short) (narrow) %v211_v40, 8 }
 0x164   :  { %v229_v41 = vpop.trf.xlu0 }
 0x165   :  { %246 = vst.msk [vmem:[#allocation7] sm:$0xff] %vm245_vm0, %v229_v41 }
 0x166   :  { %257 = dma.vmem_to_hbm [thread:$0]  %s253_s1, 128, %s255_s23, [#allocation4]  }
 0x167   :  { %381 = dma.done.wait [#allocation4], 128  }
 0x168   :  { %382 = vsyncadd [#allocation4], 4294967168 }
 0x169   :  { %262 = vsyncpa [#allocation3], 1 }
 0x16a   :  { %263 = vsyncpa [#allocation6], 1 }
 0x16b   :  { %264 = vsyncpa [#allocation4], 1 }

</bundles_post_ra>
